<compile_context>
chip_gen: v7x
topology: tpu7x:2x2x1
jax: 0.10.0
libtpu: 0.0.40
codegen_flags: <defaults>
</compile_context>

<pallas_src>
import numpy as np

import jax
import jax.numpy as jnp
from jax import lax
from jax.experimental import pallas as pl
from jax.experimental.pallas import tpu as pltpu


# ----------------------------------------------------------------------------
# Fused encoder kernel (single gridless invocation; 4 matmuls total)
# ----------------------------------------------------------------------------
def _encoder_kernel(x_ref, w1_ref, b1_ref, w2_ref, b2_ref,
                    f1_ref, bf1_ref, f2_ref, bf2_ref, o_ref,
                    lhs2_ref, flat_ref):
    f32 = jnp.float32
    B = x_ref.shape[0] // 8          # conv1 LHS has 8 rows (output rows) per image
    R = 4 * B

    # ---- conv1 (3x3, s2, p1) + bias + ReLU: one matmul, taps folded into K=216.
    y1 = jnp.dot(x_ref[...], w1_ref[...], preferred_element_type=f32)
    y1 = jnp.maximum(y1 + b1_ref[...], 0.0)          # (8B, 64), cols (wo, c1)
    # row blocks: y1[0:R]  = even output rows (ho = 2s), order (s, b)
    #             y1[R:2R] = odd  output rows (ho = 2s+1), order (s, b)

    # ---- assemble conv2's im2col LHS: rows (h2, b), K = 3 taps * 64 = 192.
    # tap i needs conv1 rows ho = 2*h2 + i - 1; i=0 is the odd block shifted
    # down one s-group (the top B rows are conv2's zero padding ring).
    lhs2_ref[0:B, 0:64] = jnp.zeros((B, 64), f32)     # ho = -1  (padding)
    lhs2_ref[B:R, 0:64] = y1[R:2 * R - B, :]          # odd rows, s = h2 - 1
    lhs2_ref[:, 64:128] = y1[0:R, :]                  # even rows, s = h2
    lhs2_ref[:, 128:192] = y1[R:2 * R, :]             # odd rows,  s = h2

    # ---- conv2 (3x3, s2, p1) + bias + ReLU: one matmul, K=192 (width padding
    # is folded into zero bands of w2).
    y2 = jnp.dot(lhs2_ref[...], w2_ref[...], preferred_element_type=f32)
    y2 = jnp.maximum(y2 + b2_ref[...], 0.0)           # (4B, 64), cols (w2, c2)

    # ---- flatten to a lane-dense (B, 256) row (order h2, w2, c2), then
    # fc1 + ReLU and fc2 as one matmul each; single (B, n_z) output store.
    for h in range(4):
        flat_ref[:, 64 * h:64 * (h + 1)] = y2[h * B:(h + 1) * B, :]
    z1 = jnp.maximum(jnp.dot(flat_ref[...], f1_ref[...],
                             preferred_element_type=f32) + bf1_ref[...], 0.0)
    o_ref[...] = (jnp.dot(z1, f2_ref[...], preferred_element_type=f32)
                  + bf2_ref[...])


# ----------------------------------------------------------------------------
# One-time parameter preparation (host side, numpy): banded conv RHS matrices,
# tiled bias rows, flatten permutation folded into fc1, fc2 transpose.
# ----------------------------------------------------------------------------
def prepare_params(conv1_w, conv1_b, conv2_w, conv2_b, fc1_w, fc1_b, fc2_w, fc2_b):
    conv1_w = np.asarray(conv1_w, np.float32)            # (8, 4, 3, 3)  OIHW
    conv2_w = np.asarray(conv2_w, np.float32)            # (16, 8, 3, 3)
    fc1_w = np.asarray(fc1_w, np.float32)                # (32, 256)
    fc2_w = np.asarray(fc2_w, np.float32)                # (n_z, 32)

    C1o, C1i = conv1_w.shape[:2]                         # 8, 4
    C2o, C2i = conv2_w.shape[:2]                         # 16, 8
    Wo1, Wo2 = 8, 4
    Wp = 2 * Wo1 + 2                                     # padded input width 18

    # conv1 RHS: (3*18*4, 8*8) = (216, 64); row = (i, padded col wp, ci),
    # col = (wo, co); output col wo reads padded cols 2*wo + j.
    w1 = np.zeros((3, Wp, C1i, Wo1, C1o), np.float32)
    for i in range(3):
        for j in range(3):
            wt = conv1_w[:, :, i, j].T                   # (ci, co)
            for wo in range(Wo1):
                w1[i, 2 * wo + j, :, wo, :] += wt
    w1 = w1.reshape(3 * Wp * C1i, Wo1 * C1o)
    b1 = np.tile(np.asarray(conv1_b, np.float32), Wo1).reshape(1, -1)   # (1, 64)

    # conv2 RHS: (3*8*8, 4*16) = (192, 64); row = (tap i, wo, c1), col = (w2, c2);
    # output col w2 reads conv1-output cols wo = 2*w2 + j - 1 (out-of-range taps
    # are width padding -> coefficient stays 0).
    w2 = np.zeros((3, Wo1, C2i, Wo2, C2o), np.float32)
    for i in range(3):
        for j in range(3):
            wt = conv2_w[:, :, i, j].T                   # (c1, c2)
            for w2o in range(Wo2):
                wo = 2 * w2o + j - 1
                if 0 <= wo < Wo1:
                    w2[i, wo, :, w2o, :] += wt
    w2 = w2.reshape(3 * Wo1 * C2i, Wo2 * C2o)
    b2 = np.tile(np.asarray(conv2_b, np.float32), Wo2).reshape(1, -1)   # (1, 64)

    # fc1: fold PyTorch's NCHW flatten (c2, h2, w2) into the weight so the
    # kernel's lane-dense (h2, w2, c2) row is consumed directly: (256, 32).
    hid = fc1_w.shape[0]
    f1 = np.transpose(fc1_w.reshape(hid, C2o, Wo2, Wo2),
                      (2, 3, 1, 0)).reshape(Wo2 * Wo2 * C2o, hid)
    bf1 = np.asarray(fc1_b, np.float32).reshape(1, -1)
    f2 = fc2_w.T                                          # (32, n_z)
    bf2 = np.asarray(fc2_b, np.float32).reshape(1, -1)

    arrs = dict(w1=w1, b1=b1, w2=w2, b2=b2, f1=f1, bf1=bf1, f2=f2, bf2=bf2)
    return {k: jnp.asarray(v, jnp.float32) for k, v in arrs.items()}


# ----------------------------------------------------------------------------
# Per-forward input prep: NCHW -> padded NHWC -> per-output-row im2col with all
# 9 taps folded into K=216, rows ordered (parity, s, b).  A few cheap XLA ops
# on the ~4 KiB input.
# ----------------------------------------------------------------------------
def _prep_input(x_nchw):
    B, C, H, W = x_nchw.shape                            # (B, 4, 16, 16)
    Ho = H // 2
    x = jnp.transpose(x_nchw, (0, 2, 3, 1))              # (B, 16, 16, 4) NHWC
    xp = jnp.pad(x, ((0, 0), (1, 1), (1, 1), (0, 0)))    # (B, 18, 18, 4)
    # output row ho reads padded rows 2*ho + i, i = 0..2
    xw = jnp.stack([xp[:, i:i + 2 * Ho:2, :, :] for i in range(3)], axis=2)
    xw = xw.reshape(B, Ho, 3 * (W + 2) * C)              # features (i, wp, ci)
    xw = xw.reshape(B, Ho // 2, 2, 3 * (W + 2) * C)      # (b, s, a)  ho = 2s+a
    xw = jnp.transpose(xw, (2, 1, 0, 3))                 # (a, s, b, K)
    return xw.reshape(B * Ho, 3 * (W + 2) * C)           # (8B, 216)


def encoder_forward(x_nchw, prepped):
    B = x_nchw.shape[0]
    n_z = prepped["bf2"].shape[-1]
    xp = _prep_input(x_nchw)

    args = (xp, prepped["w1"], prepped["b1"], prepped["w2"], prepped["b2"],
            prepped["f1"], prepped["bf1"], prepped["f2"], prepped["bf2"])

    def full_spec(a):
        return pl.BlockSpec(a.shape, lambda: (0,) * a.ndim)

    return pl.pallas_call(
        _encoder_kernel,
        out_shape=jax.ShapeDtypeStruct((B, n_z), jnp.float32),
        in_specs=[full_spec(a) for a in args],
        out_specs=pl.BlockSpec((B, n_z), lambda: (0, 0)),
        scratch_shapes=[pltpu.VMEM((4 * B, 192), jnp.float32),   # conv2 im2col LHS
                        pltpu.VMEM((B, 256), jnp.float32)],      # lane-dense flatten
    )(*args)


# ----------------------------------------------------------------------------
# Pure-JAX reference (lax.conv) for validation
# ----------------------------------------------------------------------------
def encoder_forward_ref(x_nchw, raw):
    y = x_nchw
    for (w, b, stride, pad) in raw["conv_stack"]:
        y = lax.conv_general_dilated(
            y, w, window_strides=(stride, stride),
            padding=[(pad, pad), (pad, pad)],
            dimension_numbers=("NCHW", "OIHW", "NCHW"))
        y = jax.nn.relu(y + b.reshape(1, -1, 1, 1))
    y = y.reshape(y.shape[0], -1)
    (w1, b1), (w2, b2) = raw["conv2z"]
    y = jax.nn.relu(y @ w1.T + b1)
    return y @ w2.T + b2


if __name__ == "__main__":
    key = jax.random.PRNGKey(0)
    k_x, k1, k2, k3, k4 = jax.random.split(key, 5)

    B, Cin, H, W = 2, 4, 16, 16
    n_z = 8
    hidden = 32

    x = jax.random.normal(k_x, (B, Cin, H, W), dtype=jnp.float32)

    # deterministic parameters (PyTorch layouts: conv OIHW, linear (out, in))
    conv1_w = 0.1 * jax.random.normal(k1, (8, Cin, 3, 3), dtype=jnp.float32)
    conv1_b = 0.01 * jnp.arange(8, dtype=jnp.float32)
    conv2_w = 0.1 * jax.random.normal(k2, (16, 8, 3, 3), dtype=jnp.float32)
    conv2_b = 0.01 * jnp.arange(16, dtype=jnp.float32)

    flat_dim = 16 * (H // 4) * (W // 4)                  # 16 * 4 * 4 = 256
    fc1_w = 0.05 * jax.random.normal(k3, (hidden, flat_dim), dtype=jnp.float32)
    fc1_b = 0.01 * jnp.arange(hidden, dtype=jnp.float32)
    fc2_w = 0.05 * jax.random.normal(k4, (n_z, hidden), dtype=jnp.float32)
    fc2_b = 0.01 * jnp.arange(n_z, dtype=jnp.float32)

    raw_params = {
        "conv_stack": [(conv1_w, conv1_b, 2, 1), (conv2_w, conv2_b, 2, 1)],
        "conv2z": [(fc1_w, fc1_b), (fc2_w, fc2_b)],
    }

    # one-time host-side weight preparation (banded conv RHS, folded layouts)
    prepped = prepare_params(conv1_w, conv1_b, conv2_w, conv2_b,
                             fc1_w, fc1_b, fc2_w, fc2_b)

    fwd = jax.jit(encoder_forward)
    z = jax.block_until_ready(fwd(x, prepped))
    assert z.shape == (B, n_z), z.shape

    z_ref = jax.block_until_ready(encoder_forward_ref(x, raw_params))
    assert jnp.allclose(z, z_ref, atol=1e-4, rtol=1e-3), "mismatch vs reference"

    print("KERNEL_OK")
</pallas_src>

<mosaic_0001>
module attributes {stable_mosaic.version = 11 : i64} {
  func.func @_encoder_kernel(%arg0: memref<16x216xf32, #tpu.memory_space<vmem>>, %arg1: memref<216x64xf32, #tpu.memory_space<vmem>>, %arg2: memref<1x64xf32, #tpu.memory_space<vmem>>, %arg3: memref<192x64xf32, #tpu.memory_space<vmem>>, %arg4: memref<1x64xf32, #tpu.memory_space<vmem>>, %arg5: memref<256x32xf32, #tpu.memory_space<vmem>>, %arg6: memref<1x32xf32, #tpu.memory_space<vmem>>, %arg7: memref<32x8xf32, #tpu.memory_space<vmem>>, %arg8: memref<1x8xf32, #tpu.memory_space<vmem>>, %arg9: memref<2x8xf32, #tpu.memory_space<vmem>>, %arg10: memref<8x192xf32, #tpu.memory_space<vmem>>, %arg11: memref<2x256xf32, #tpu.memory_space<vmem>>) attributes {dimension_semantics = [], scalar_prefetch = 0 : i64, scratch_operands = 2 : i64, tpu.core_type = #tpu.core_type<tc>} {
    %c0 = arith.constant 0 : index
    %c0_0 = arith.constant 0 : index
    %0 = vector.load %arg0[%c0, %c0_0] : memref<16x216xf32, #tpu.memory_space<vmem>>, vector<16x216xf32>
    %c0_1 = arith.constant 0 : index
    %c0_2 = arith.constant 0 : index
    %1 = vector.load %arg1[%c0_1, %c0_2] : memref<216x64xf32, #tpu.memory_space<vmem>>, vector<216x64xf32>
    %cst = arith.constant dense<0.000000e+00> : vector<16x64xf32>
    %2 = tpu.matmul %0, %1, %cst {dimension_numbers = #tpu.dot_dimension_numbers<[1], [0], [0], [1], [0, 0, 1, 1], [], []>} : vector<16x216xf32>, vector<216x64xf32>, vector<16x64xf32> -> vector<16x64xf32>
    %c0_3 = arith.constant 0 : index
    %c0_4 = arith.constant 0 : index
    %3 = vector.load %arg2[%c0_3, %c0_4] : memref<1x64xf32, #tpu.memory_space<vmem>>, vector<1x64xf32>
    %4 = vector.broadcast %3 : vector<1x64xf32> to vector<16x64xf32>
    %5 = arith.addf %2, %4 : vector<16x64xf32>
    %cst_5 = arith.constant 0.000000e+00 : f32
    %6 = vector.broadcast %cst_5 : f32 to vector<16x64xf32>
    %7 = arith.maximumf %5, %6 : vector<16x64xf32>
    %cst_6 = arith.constant 0.000000e+00 : f32
    %8 = vector.broadcast %cst_6 : f32 to vector<2x64xf32>
    %c0_7 = arith.constant 0 : index
    %c0_8 = arith.constant 0 : index
    %9 = vector.load %arg10[%c0_7, %c0_8] : memref<8x192xf32, #tpu.memory_space<vmem>>, vector<2x64xf32>
    tpu.vector_store %arg10[%c0_7, %c0_8], %8 {strides = array<i32>} : memref<8x192xf32, #tpu.memory_space<vmem>>, vector<2x64xf32>,
    %10 = vector.extract_strided_slice %7 {offsets = [8, 0], sizes = [6, 64], strides = [1, 1]} : vector<16x64xf32> to vector<6x64xf32>
    %c2 = arith.constant 2 : index
    %c0_9 = arith.constant 0 : index
    %11 = vector.load %arg10[%c2, %c0_9] : memref<8x192xf32, #tpu.memory_space<vmem>>, vector<6x64xf32>
    tpu.vector_store %arg10[%c2, %c0_9], %10 {strides = array<i32>} : memref<8x192xf32, #tpu.memory_space<vmem>>, vector<6x64xf32>,
    %12 = vector.extract_strided_slice %7 {offsets = [0, 0], sizes = [8, 64], strides = [1, 1]} : vector<16x64xf32> to vector<8x64xf32>
    %c0_10 = arith.constant 0 : index
    %c64 = arith.constant 64 : index
    %13 = vector.load %arg10[%c0_10, %c64] : memref<8x192xf32, #tpu.memory_space<vmem>>, vector<8x64xf32>
    tpu.vector_store %arg10[%c0_10, %c64], %12 {strides = array<i32>} : memref<8x192xf32, #tpu.memory_space<vmem>>, vector<8x64xf32>,
    %14 = vector.extract_strided_slice %7 {offsets = [8, 0], sizes = [8, 64], strides = [1, 1]} : vector<16x64xf32> to vector<8x64xf32>
    %c0_11 = arith.constant 0 : index
    %c128 = arith.constant 128 : index
    %15 = vector.load %arg10[%c0_11, %c128] : memref<8x192xf32, #tpu.memory_space<vmem>>, vector<8x64xf32>
    tpu.vector_store %arg10[%c0_11, %c128], %14 {strides = array<i32>} : memref<8x192xf32, #tpu.memory_space<vmem>>, vector<8x64xf32>,
    %c0_12 = arith.constant 0 : index
    %c0_13 = arith.constant 0 : index
    %16 = vector.load %arg10[%c0_12, %c0_13] : memref<8x192xf32, #tpu.memory_space<vmem>>, vector<8x192xf32>
    %c0_14 = arith.constant 0 : index
    %c0_15 = arith.constant 0 : index
    %17 = vector.load %arg3[%c0_14, %c0_15] : memref<192x64xf32, #tpu.memory_space<vmem>>, vector<192x64xf32>
    %cst_16 = arith.constant dense<0.000000e+00> : vector<8x64xf32>
    %18 = tpu.matmul %16, %17, %cst_16 {dimension_numbers = #tpu.dot_dimension_numbers<[1], [0], [0], [1], [0, 0, 1, 1], [], []>} : vector<8x192xf32>, vector<192x64xf32>, vector<8x64xf32> -> vector<8x64xf32>
    %c0_17 = arith.constant 0 : index
    %c0_18 = arith.constant 0 : index
    %19 = vector.load %arg4[%c0_17, %c0_18] : memref<1x64xf32, #tpu.memory_space<vmem>>, vector<1x64xf32>
    %20 = vector.broadcast %19 : vector<1x64xf32> to vector<8x64xf32>
    %21 = arith.addf %18, %20 : vector<8x64xf32>
    %cst_19 = arith.constant 0.000000e+00 : f32
    %22 = vector.broadcast %cst_19 : f32 to vector<8x64xf32>
    %23 = arith.maximumf %21, %22 : vector<8x64xf32>
    %24 = vector.extract_strided_slice %23 {offsets = [0, 0], sizes = [2, 64], strides = [1, 1]} : vector<8x64xf32> to vector<2x64xf32>
    %c0_20 = arith.constant 0 : index
    %c0_21 = arith.constant 0 : index
    %25 = vector.load %arg11[%c0_20, %c0_21] : memref<2x256xf32, #tpu.memory_space<vmem>>, vector<2x64xf32>
    tpu.vector_store %arg11[%c0_20, %c0_21], %24 {strides = array<i32>} : memref<2x256xf32, #tpu.memory_space<vmem>>, vector<2x64xf32>,
    %26 = vector.extract_strided_slice %23 {offsets = [2, 0], sizes = [2, 64], strides = [1, 1]} : vector<8x64xf32> to vector<2x64xf32>
    %c0_22 = arith.constant 0 : index
    %c64_23 = arith.constant 64 : index
    %27 = vector.load %arg11[%c0_22, %c64_23] : memref<2x256xf32, #tpu.memory_space<vmem>>, vector<2x64xf32>
    tpu.vector_store %arg11[%c0_22, %c64_23], %26 {strides = array<i32>} : memref<2x256xf32, #tpu.memory_space<vmem>>, vector<2x64xf32>,
    %28 = vector.extract_strided_slice %23 {offsets = [4, 0], sizes = [2, 64], strides = [1, 1]} : vector<8x64xf32> to vector<2x64xf32>
    %c0_24 = arith.constant 0 : index
    %c128_25 = arith.constant 128 : index
    %29 = vector.load %arg11[%c0_24, %c128_25] : memref<2x256xf32, #tpu.memory_space<vmem>>, vector<2x64xf32>
    tpu.vector_store %arg11[%c0_24, %c128_25], %28 {strides = array<i32>} : memref<2x256xf32, #tpu.memory_space<vmem>>, vector<2x64xf32>,
    %30 = vector.extract_strided_slice %23 {offsets = [6, 0], sizes = [2, 64], strides = [1, 1]} : vector<8x64xf32> to vector<2x64xf32>
    %c0_26 = arith.constant 0 : index
    %c192 = arith.constant 192 : index
    %31 = vector.load %arg11[%c0_26, %c192] : memref<2x256xf32, #tpu.memory_space<vmem>>, vector<2x64xf32>
    tpu.vector_store %arg11[%c0_26, %c192], %30 {strides = array<i32>} : memref<2x256xf32, #tpu.memory_space<vmem>>, vector<2x64xf32>,
    %c0_27 = arith.constant 0 : index
    %c0_28 = arith.constant 0 : index
    %32 = vector.load %arg11[%c0_27, %c0_28] : memref<2x256xf32, #tpu.memory_space<vmem>>, vector<2x256xf32>
    %c0_29 = arith.constant 0 : index
    %c0_30 = arith.constant 0 : index
    %33 = vector.load %arg5[%c0_29, %c0_30] : memref<256x32xf32, #tpu.memory_space<vmem>>, vector<256x32xf32>
    %cst_31 = arith.constant dense<0.000000e+00> : vector<2x32xf32>
    %34 = tpu.matmul %32, %33, %cst_31 {dimension_numbers = #tpu.dot_dimension_numbers<[1], [0], [0], [1], [0, 0, 1, 1], [], []>} : vector<2x256xf32>, vector<256x32xf32>, vector<2x32xf32> -> vector<2x32xf32>
    %c0_32 = arith.constant 0 : index
    %c0_33 = arith.constant 0 : index
    %35 = vector.load %arg6[%c0_32, %c0_33] : memref<1x32xf32, #tpu.memory_space<vmem>>, vector<1x32xf32>
    %36 = vector.broadcast %35 : vector<1x32xf32> to vector<2x32xf32>
    %37 = arith.addf %34, %36 : vector<2x32xf32>
    %cst_34 = arith.constant 0.000000e+00 : f32
    %38 = vector.broadcast %cst_34 : f32 to vector<2x32xf32>
    %39 = arith.maximumf %37, %38 : vector<2x32xf32>
    %c0_35 = arith.constant 0 : index
    %c0_36 = arith.constant 0 : index
    %40 = vector.load %arg7[%c0_35, %c0_36] : memref<32x8xf32, #tpu.memory_space<vmem>>, vector<32x8xf32>
    %cst_37 = arith.constant dense<0.000000e+00> : vector<2x8xf32>
    %41 = tpu.matmul %39, %40, %cst_37 {dimension_numbers = #tpu.dot_dimension_numbers<[1], [0], [0], [1], [0, 0, 1, 1], [], []>} : vector<2x32xf32>, vector<32x8xf32>, vector<2x8xf32> -> vector<2x8xf32>
    %c0_38 = arith.constant 0 : index
    %c0_39 = arith.constant 0 : index
    %42 = vector.load %arg8[%c0_38, %c0_39] : memref<1x8xf32, #tpu.memory_space<vmem>>, vector<1x8xf32>
    %43 = vector.broadcast %42 : vector<1x8xf32> to vector<2x8xf32>
    %44 = arith.addf %41, %43 : vector<2x8xf32>
    %c0_40 = arith.constant 0 : index
    %c0_41 = arith.constant 0 : index
    %45 = vector.load %arg9[%c0_40, %c0_41] : memref<2x8xf32, #tpu.memory_space<vmem>>, vector<2x8xf32>
    tpu.vector_store %arg9[%c0_40, %c0_41], %44 {strides = array<i32>} : memref<2x8xf32, #tpu.memory_space<vmem>>, vector<2x8xf32>,
    return
  }
}

</mosaic_0001>

<bundles_post_ra>
// kernel: encoder_forward.1
= control target key start
LH: loop header
LB: loop body
LE: loop exit
PB: predicated region body
PF: predicated region fallthrough
CT: control target
= control target key end

     0   :  { %vm155_vm0 = vcmask 517120   ;;  %v733_v3 = vmov 0.0|0.0   ;;  %v734_v6 = vmov 0.0   ;;  %vm71_vm1 = vcmask 719872   ;;  %s1124_s0 = inlined_call_operand.vmem [shape: f32[16,216], index: 0, kind: input, shape index: {}]   ;;  %s1125_s1 = inlined_call_operand.vmem [shape: f32[216,64], index: 1, kind: input, shape index: {}]   ;;  %s1126_s2 = inlined_call_operand.vmem [shape: f32[1,64], index: 2, kind: input, shape index: {}]   ;;  %s1127_s3 = inlined_call_operand.vmem [shape: f32[192,64], index: 3, kind: input, shape index: {}]   ;;  %s1128_s4 = inlined_call_operand.vmem [shape: f32[1,64], index: 4, kind: input, shape index: {}]   ;;  %s1129_s5 = inlined_call_operand.vmem [shape: f32[256,32], index: 5, kind: input, shape index: {}]   ;;  %s1130_s6 = inlined_call_operand.vmem [shape: f32[1,32], index: 6, kind: input, shape index: {}]   ;;  %s1131_s7 = inlined_call_operand.vmem [shape: f32[32,8], index: 7, kind: input, shape index: {}]   ;;  %s1132_s8 = inlined_call_operand.vmem [shape: f32[1,8], index: 8, kind: input, shape index: {}]   ;;  %s1133_s9 = inlined_call_operand.hbm [shape: f32[2,8], index: 9, kind: output, shape index: {}]  }
   0x1   :  { %v37_v0 = vld [vmem:[%s1125_s1] sm:$0xff]  ;;  %v38_v1 = vld [vmem:[%s1125_s1 + $0x8] sm:$0xff]  ;;  %v39_v2 = vld [vmem:[%s1125_s1 + $0x10] sm:$0xff]  ;;  %590 = vmatprep.subr.bf16.mxu0 %v733_v3  ;;  %156 = vst.msk [vmem:[#allocation2] sm:$0x3] %vm155_vm0, %v734_v6  ;;  %629 = vmatprep.subr.bf16.mxu1 %v733_v3 }
   0x2   :  { %v591_v4 = vpack.c.bf16 %v38_v1, %v37_v0  ;;  %v40_v5 = vld [vmem:[%s1125_s1 + $0x18] sm:$0xff]  ;;  %v41_v8 = vld [vmem:[%s1125_s1 + $0x20] sm:$0xff]  ;;  %v42_v9 = vld [vmem:[%s1125_s1 + $0x28] sm:$0xff] }
   0x3   :  { %v594_v7 = vpack.c.bf16 %v40_v5, %v39_v2  ;;  %v597_v10 = vpack.c.bf16 %v42_v9, %v41_v8  ;;  %v43_v11 = vld [vmem:[%s1125_s1 + $0x30] sm:$0xff]  ;;  %v44_v12 = vld [vmem:[%s1125_s1 + $0x38] sm:$0xff]  ;;  %v34_v13 = vld [vmem:[%s1124_s0 + $0x8] sm:$0xff] }
   0x4   :  { %592 = vmatpush1.bf16.msra.mxu0 %v591_v4  ;;  %531 = vmatprep.mubr.msk.f32.mxu0 %vm71_vm1, %v34_v13 }
   0x5   :  { %593 = vmatprep.subr.bf16.mxu0 %v733_v3 }
   0x8   :  { %595 = vmatpush1.bf16.msra.mxu0 %v594_v7 }
   0x9   :  { %596 = vmatprep.subr.bf16.mxu0 %v733_v3 }
   0xa   :  { %14 = vsyncpa [#allocation5], 0  ;;  %v600_v14 = vpack.c.bf16 %v44_v12, %v43_v11  ;;  %v45_v15 = vld [vmem:[%s1125_s1 + $0x40] sm:$0xff]  ;;  %v46_v16 = vld [vmem:[%s1125_s1 + $0x48] sm:$0xff]  ;;  %s735_s11 = smov 64   ;;  %vm168_vm2 = vcmask 523264  }
   0xb   :  { %v603_v17 = vpack.c.bf16 %v46_v16, %v45_v15  ;;  %v47_v18 = vld [vmem:[%s1125_s1 + $0x50] sm:$0xff]  ;;  %v48_v19 = vld [vmem:[%s1125_s1 + $0x58] sm:$0xff]  ;;  %v49_v21 = vld [vmem:[%s1125_s1 + $0x60] sm:$0xff]  ;;  %vm160_vm3 = vcmask 523266   ;;  %vm166_vm4 = vcmask 1048064   ;;  %vm290_vm5 = vcmask 1041920  }
   0xc   :  { %598 = vmatpush1.bf16.msra.mxu0 %v597_v10  ;;  %v606_v20 = vpack.c.bf16 %v48_v19, %v47_v18  ;;  %v50_v22 = vld [vmem:[%s1125_s1 + $0x68] sm:$0xff]  ;;  %v51_v24 = vld [vmem:[%s1125_s1 + $0x70] sm:$0xff]  ;;  %v52_v25 = vld [vmem:[%s1125_s1 + $0x78] sm:$0xff]  ;;  %vm737_vm6 = vmmov 0   ;;  %vm440_vm7 = vcmask 261120   ;;  %vm514_vm8 = vcmask 58368  }
   0xd   :  { %599 = vmatprep.subr.bf16.mxu0 %v733_v3  ;;  %v609_v23 = vpack.c.bf16 %v50_v22, %v49_v21  ;;  %v612_v26 = vpack.c.bf16 %v52_v25, %v51_v24  ;;  %v53_v27 = vld [vmem:[%s1125_s1 + $0x80] sm:$0xff]  ;;  %v54_v28 = vld [vmem:[%s1125_s1 + $0x88] sm:$0xff]  ;;  %v55_v30 = vld [vmem:[%s1125_s1 + $0x90] sm:$0xff] }
   0xe   :  { %v615_v29 = vpack.c.bf16 %v54_v28, %v53_v27  ;;  %v56_v31 = vld [vmem:[%s1125_s1 + $0x98] sm:$0xff]  ;;  %v57_v33 = vld [vmem:[%s1125_s1 + $0xa0] sm:$0xff]  ;;  %v58_v34 = vld [vmem:[%s1125_s1 + $0xa8] sm:$0xff] }
   0xf   :  { %v618_v32 = vpack.c.bf16 %v56_v31, %v55_v30  ;;  %v621_v35 = vpack.c.bf16 %v58_v34, %v57_v33  ;;  %v59_v36 = vld [vmem:[%s1125_s1 + $0xb0] sm:$0xff]  ;;  %v60_v37 = vld [vmem:[%s1125_s1 + $0xb8] sm:$0xff]  ;;  %v61_v39 = vld [vmem:[%s1125_s1 + $0xc0] sm:$0xff] }
  0x10   :  { %601 = vmatpush1.bf16.msra.mxu0 %v600_v14  ;;  %v624_v38 = vpack.c.bf16 %v60_v37, %v59_v36  ;;  %v62_v40 = vld [vmem:[%s1125_s1 + $0xc8] sm:$0xff]  ;;  %v63_v42 = vld [vmem:[%s1125_s1 + $0xd0] sm:$0xff]  ;;  %v33_v43 = vld [vmem:[%s1124_s0] sm:$0xff] }
  0x11   :  { %602 = vmatprep.subr.bf16.mxu0 %v733_v3  ;;  %v627_v41 = vpack.c.bf16 %v62_v40, %v61_v39  ;;  %v36_v44 = vld [vmem:[%s1124_s0 + $0x18] sm:$0xff]  ;;  %v35_v45 = vld [vmem:[%s1124_s0 + $0x10] sm:$0xff]  ;;  %v172_v46 = vld [vmem:[%s1127_s3] sm:$0xff] }
  0x12   :  { %v173_v47 = vld [vmem:[%s1127_s3 + $0x8] sm:$0xff]  ;;  %v174_v48 = vld [vmem:[%s1127_s3 + $0x10] sm:$0xff]  ;;  %v175_v50 = vld [vmem:[%s1127_s3 + $0x18] sm:$0xff] }
  0x13   :  { %v630_v49 = vpack.c.bf16 %v173_v47, %v172_v46  ;;  %v633_v51 = vpack.c.bf16 %v175_v50, %v174_v48  ;;  %v176_v52 = vld [vmem:[%s1127_s3 + $0x20] sm:$0xff]  ;;  %v177_v53 = vld [vmem:[%s1127_s3 + $0x28] sm:$0xff]  ;;  %v178_v55 = vld [vmem:[%s1127_s3 + $0x30] sm:$0xff] }
  0x14   :  { %604 = vmatpush1.bf16.msra.mxu0 %v603_v17  ;;  %v636_v54 = vpack.c.bf16 %v177_v53, %v176_v52  ;;  %v179_v56 = vld [vmem:[%s1127_s3 + $0x38] sm:$0xff]  ;;  %v180_v58 = vld [vmem:[%s1127_s3 + $0x40] sm:$0xff]  ;;  %v181_v59 = vld [vmem:[%s1127_s3 + $0x48] sm:$0xff] }
  0x15   :  { %605 = vmatprep.subr.bf16.mxu0 %v733_v3  ;;  %631 = vmatpush1.bf16.msra.mxu1 %v630_v49  ;;  %v639_v57 = vpack.c.bf16 %v179_v56, %v178_v55  ;;  %v642_v60 = vpack.c.bf16 %v181_v59, %v180_v58  ;;  %v182_v61 = vld [vmem:[%s1127_s3 + $0x50] sm:$0xff]  ;;  %v183_v62 = vld [vmem:[%s1127_s3 + $0x58] sm:$0xff]  ;;  %v184_v0 = vld [vmem:[%s1127_s3 + $0x60] sm:$0xff] }
  0x16   :  { %632 = vmatprep.subr.bf16.mxu1 %v733_v3  ;;  %v645_v63 = vpack.c.bf16 %v183_v62, %v182_v61  ;;  %v185_v1 = vld [vmem:[%s1127_s3 + $0x68] sm:$0xff]  ;;  %v186_v4 = vld [vmem:[%s1127_s3 + $0x70] sm:$0xff]  ;;  %v187_v5 = vld [vmem:[%s1127_s3 + $0x78] sm:$0xff] }
  0x17   :  { %v648_v2 = vpack.c.bf16 %v185_v1, %v184_v0  ;;  %v651_v7 = vpack.c.bf16 %v187_v5, %v186_v4  ;;  %v188_v8 = vld [vmem:[%s1127_s3 + $0x80] sm:$0xff]  ;;  %v189_v9 = vld [vmem:[%s1127_s3 + $0x88] sm:$0xff]  ;;  %v190_v11 = vld [vmem:[%s1127_s3 + $0x90] sm:$0xff]  ;;  %v282_v1 = vlaneseq }
  0x18   :  { %607 = vmatpush1.bf16.msra.mxu0 %v606_v20  ;;  %v654_v10 = vpack.c.bf16 %v189_v9, %v188_v8  ;;  %v191_v12 = vld [vmem:[%s1127_s3 + $0x98] sm:$0xff]  ;;  %v192_v14 = vld [vmem:[%s1127_s3 + $0xa0] sm:$0xff]  ;;  %v193_v15 = vld [vmem:[%s1127_s3 + $0xa8] sm:$0xff] }
  0x19   :  { %608 = vmatprep.subr.bf16.mxu0 %v733_v3  ;;  %634 = vmatpush1.bf16.msra.mxu1 %v633_v51  ;;  %v657_v13 = vpack.c.bf16 %v191_v12, %v190_v11  ;;  %v660_v16 = vpack.c.bf16 %v193_v15, %v192_v14  ;;  %v194_v17 = vld [vmem:[%s1127_s3 + $0xb0] sm:$0xff]  ;;  %v195_v18 = vld [vmem:[%s1127_s3 + $0xb8] sm:$0xff]  ;;  %v530_v20 = vld [vmem:[%s1126_s2] ss:$0 sm:$0xff]  ;;  %v283_v12 = vshrl.u32 %v282_v1, 7 }
  0x1a   :  { %635 = vmatprep.subr.bf16.mxu1 %v733_v3  ;;  %v663_v19 = vpack.c.bf16 %v195_v18, %v194_v17  ;;  %v324_v33 = vld [vmem:[%s1129_s5 + $0x80] sm:$0xff]  ;;  %v325_v34 = vld [vmem:[%s1129_s5 + $0x88] sm:$0xff]  ;;  %v327_v39 = vld [vmem:[%s1129_s5 + $0x98] sm:$0xff] }
  0x1b   :  { %v665_v36 = vpack.c.bf16 %v325_v34, %v324_v33  ;;  %v309_v37 = vld [vmem:[%s1129_s5 + $0x8] sm:$0xff]  ;;  %v312_v48 = vld [vmem:[%s1129_s5 + $0x20] sm:$0xff]  ;;  %v330_v50 = vld [vmem:[%s1129_s5 + $0xb0] sm:$0xff] }
  0x1c   :  { %610 = vmatpush1.bf16.msra.mxu0 %v609_v23  ;;  %v313_v49 = vld [vmem:[%s1129_s5 + $0x28] sm:$0xff]  ;;  %v331_v51 = vld [vmem:[%s1129_s5 + $0xb8] sm:$0xff]  ;;  %v332_v56 = vld [vmem:[%s1129_s5 + $0xc0] sm:$0xff] }
  0x1d   :  { %611 = vmatprep.subr.bf16.mxu0 %v733_v3  ;;  %637 = vmatpush1.bf16.msra.mxu1 %v636_v54  ;;  %v675_v52 = vpack.c.bf16 %v313_v49, %v312_v48  ;;  %v677_v53 = vpack.c.bf16 %v331_v51, %v330_v50  ;;  %v314_v54 = vld [vmem:[%s1129_s5 + $0x30] sm:$0xff]  ;;  %v315_v55 = vld [vmem:[%s1129_s5 + $0x38] sm:$0xff]  ;;  %v317_v61 = vld [vmem:[%s1129_s5 + $0x48] sm:$0xff] }
  0x1e   :  { %638 = vmatprep.subr.bf16.mxu1 %v733_v3  ;;  %v679_v58 = vpack.c.bf16 %v315_v55, %v314_v54  ;;  %v335_v4 = vld [vmem:[%s1129_s5 + $0xd8] sm:$0xff]  ;;  %v337_v14 = vld [vmem:[%s1129_s5 + $0xe8] sm:$0xff]  ;;  %v320_v15 = vld [vmem:[%s1129_s5 + $0x60] sm:$0xff] }
  0x1f   :  { %v319_v8 = vld [vmem:[%s1129_s5 + $0x58] sm:$0xff]  ;;  %v321_v17 = vld [vmem:[%s1129_s5 + $0x68] sm:$0xff]  ;;  %v338_v18 = vld [vmem:[%s1129_s5 + $0xf0] sm:$0xff] }
  0x20   :  { %613 = vmatpush1.bf16.msra.mxu0 %v612_v26  ;;  %v537_v50 = vld [vmem:[%s1132_s8] ss:$0 sm:$0xff] }
  0x21   :  { %614 = vmatprep.subr.bf16.mxu0 %v733_v3  ;;  %640 = vmatpush1.bf16.msra.mxu1 %v639_v57  ;;  %v333_v57 = vld [vmem:[%s1129_s5 + $0xc8] sm:$0xff] }
  0x22   :  { %641 = vmatprep.subr.bf16.mxu1 %v733_v3  ;;  %v681_v59 = vpack.c.bf16 %v333_v57, %v332_v56 }
  0x24   :  { %616 = vmatpush1.bf16.msra.mxu0 %v615_v29 }
  0x25   :  { %617 = vmatprep.subr.bf16.mxu0 %v733_v3  ;;  %643 = vmatpush1.bf16.msra.mxu1 %v642_v60  ;;  %v316_v60 = vld [vmem:[%s1129_s5 + $0x40] sm:$0xff] }
  0x26   :  { %644 = vmatprep.subr.bf16.mxu1 %v733_v3  ;;  %v683_v62 = vpack.c.bf16 %v317_v61, %v316_v60 }
  0x28   :  { %619 = vmatpush1.bf16.msra.mxu0 %v618_v32 }
  0x29   :  { %620 = vmatprep.subr.bf16.mxu0 %v733_v3  ;;  %646 = vmatpush1.bf16.msra.mxu1 %v645_v63  ;;  %v736_v63 = vmov 1983009808  }
  0x2a   :  { %647 = vmatprep.subr.bf16.mxu1 %v733_v3  ;;  %v280_v0 = vunpack.c.l.s4 %v736_v63 }
  0x2c   :  { %622 = vmatpush1.bf16.msra.mxu0 %v621_v35  ;;  %v308_v35 = vld [vmem:[%s1129_s5] sm:$0xff]  ;;  %v281_v11 = vunpack.c.0.s8 %v280_v0 }
  0x2d   :  { %623 = vmatprep.subr.bf16.mxu0 %v733_v3  ;;  %649 = vmatpush1.bf16.msra.mxu1 %v648_v2  ;;  %v667_v40 = vpack.c.bf16 %v309_v37, %v308_v35  ;;  %v334_v2 = vld [vmem:[%s1129_s5 + $0xd0] sm:$0xff] }
  0x2e   :  { %650 = vmatprep.subr.bf16.mxu1 %v733_v3  ;;  %v685_v5 = vpack.c.bf16 %v335_v4, %v334_v2 }
  0x30   :  { %625 = vmatpush1.bf16.msra.mxu0 %v624_v38  ;;  %v326_v38 = vld [vmem:[%s1129_s5 + $0x90] sm:$0xff] }
  0x31   :  { %626 = vmatprep.subr.bf16.mxu0 %v733_v3  ;;  %652 = vmatpush1.bf16.msra.mxu1 %v651_v7  ;;  %v318_v7 = vld [vmem:[%s1129_s5 + $0x50] sm:$0xff] }
  0x32   :  { %653 = vmatprep.subr.bf16.mxu1 %v733_v3  ;;  %v687_v9 = vpack.c.bf16 %v319_v8, %v318_v7 }
  0x34   :  { %628 = vmatpush1.bf16.msra.mxu0 %v627_v41  ;;  %v669_v41 = vpack.c.bf16 %v327_v39, %v326_v38  ;;  %v429_v39 = vld [vmem:[%s1131_s7] sm:$0xff] }
  0x35   :  { %130 = vmatprep.subr.mxu0 %v734_v6  ;;  %655 = vmatpush1.bf16.msra.mxu1 %v654_v10  ;;  %v533_v10 = vld [vmem:[%s1128_s4] ss:$0 sm:$0xff] }
  0x36   :  { %656 = vmatprep.subr.bf16.mxu1 %v733_v3 }
  0x38   :  { %131 = vmatpush1.msra.mxu0 %v63_v42  ;;  %v310_v42 = vld [vmem:[%s1129_s5 + $0x10] sm:$0xff] }
  0x39   :  { %143 = vmatmul.mubr.f32.vlgmr.msra.gmra.mrb[0].mxu0 %v33_v43  ;;  %697 = vmatprep.subr.bf16.mxu0 %v733_v3  ;;  %v311_v43 = vld [vmem:[%s1129_s5 + $0x18] sm:$0xff] }
  0x3a   :  { %532 = vmatprep.mubr.msk.f32.mxu0 %vm71_vm1, %v36_v44  ;;  %658 = vmatpush1.bf16.msra.mxu1 %v657_v13  ;;  %v328_v44 = vld [vmem:[%s1129_s5 + $0xa0] sm:$0xff]  ;;  %v671_v46 = vpack.c.bf16 %v311_v43, %v310_v42  ;;  %v431_v42 = vld [vmem:[%s1131_s7 + $0x10] sm:$0xff]  ;;  %v432_v43 = vld [vmem:[%s1131_s7 + $0x18] sm:$0xff] }
  0x3b   :  { %659 = vmatprep.subr.bf16.mxu1 %v733_v3  ;;  %v336_v13 = vld [vmem:[%s1129_s5 + $0xe0] sm:$0xff] }
  0x3d   :  { %148 = vmatmul.mubr.f32.gmra.mrb[2].mxu0 %v35_v45  ;;  %v329_v45 = vld [vmem:[%s1129_s5 + $0xa8] sm:$0xff] }
  0x3e   :  { %661 = vmatpush1.bf16.msra.mxu1 %v660_v16  ;;  %v673_v47 = vpack.c.bf16 %v329_v45, %v328_v44  ;;  %v689_v16 = vpack.c.bf16 %v337_v14, %v336_v13  ;;  %v701_v44 = vpack.c.bf16 %v432_v43, %v431_v42  ;;  %587 = vmatprep.mubr.msk.f32.mxu0 %vm737_vm6, %v734_v6 }
  0x3f   :  { %662 = vmatprep.subr.bf16.mxu1 %v733_v3 }
  0x42   :  { %664 = vmatpush1.bf16.msra.mxu1 %v663_v19  ;;  %v339_v19 = vld [vmem:[%s1129_s5 + $0xf8] sm:$0xff] }
  0x43   :  { %666 = vmatprep.subr.bf16.mxu1 %v665_v36 }
 0x10c   :  { %v144_v21 = vpop.f32.mrb[0].mxu0 }
 0x10d   :  { %v145_v22 = vadd.f32 %v530_v20, %v144_v21  ;;  %v146_v23 = vpop.f32.mrb[1].mxu0  ;;  %v691_v21 = vpack.c.bf16 %v321_v17, %v320_v15 }
 0x10e   :  { %v322_v23 = vld [vmem:[%s1129_s5 + $0x70] sm:$0xff] }
 0x10f   :  { %v153_v24 = vmax.f32 %v145_v22, 0.0  ;;  %v693_v22 = vpack.c.bf16 %v339_v19, %v338_v18 }
 0x110   :  { %v149_v25 = vpop.f32.mrb[2].mxu0 }
 0x111   :  { %163 = vrot.lane.b32.xlu0 %v153_v24, %s735_s11  ;;  %v150_v26 = vadd.f32 %v530_v20, %v149_v25  ;;  %v151_v27 = vpop.f32.mrb[3].mxu0  ;;  %v323_v24 = vld [vmem:[%s1129_s5 + $0x78] sm:$0xff] }
 0x112   :  { %v284_v27 = vsub.s32 %v281_v11, %v283_v12 }
 0x113   :  { %v154_v28 = vmax.f32 %v150_v26, 0.0 }
 0x115   :  { %v158_v29 = vrot.slane %v154_v28, 6  ;;  %169 = vst.msk [vmem:[#allocation2 + $0x8] sm:$0xff] %vm168_vm2, %v154_v28  ;;  %v695_v28 = vpack.c.bf16 %v323_v24, %v322_v23 }
 0x117   :  { %161 = vst.msk [vmem:[#allocation2] sm:$0xfc] %vm160_vm3, %v158_v29 }
 0x11c   :  { %v171_v30 = vld [vmem:[#allocation2 + $0x8] sm:$0xff] }
 0x11d   :  { %534 = vmatprep.mubr.msk.f32.mxu1 %vm168_vm2, %v171_v30 }
 0x183   :  { %v164_v31 = vpop.permute.xlu0 %163 }
 0x184   :  { %167 = vst.msk [vmem:[#allocation2] sm:$0xff] %vm166_vm4, %v164_v31 }
 0x18b   :  { %v170_v32 = vld [vmem:[#allocation2] sm:$0xff] }
 0x18c   :  { %271 = vmatmul.mubr.f32.vlgmr.msra.gmra.mrb[0].mxu1 %v170_v32 }
 0x18d   :  { %668 = vmatpush3.bf16.msra.mxu1 %v667_v40  ;;  %v430_v40 = vld [vmem:[%s1131_s7 + $0x8] sm:$0xff]  ;;  %s738_s7 = smov [#allocation4]  }
 0x18e   :  { %670 = vmatprep.subr.bf16.mxu1 %v669_v41  ;;  %v698_v41 = vpack.c.bf16 %v430_v40, %v429_v39  ;;  %s522_s13 = sshll.u32 %s738_s7, 4  ;;  %s523_s13 = int_to_ptr.vmem [resolvable:$true] %s522_s13 }
 0x18f   :  { %s709_s14 = scalar_lea.vmem %s523_s13, 32  ;;  %p714_p1 = scmp.lt.s32.totalorder %s523_s13, %s523_s13 }
 0x190   :  { %699 = vmatpush3.bf16.msra.mxu0 %v698_v41  ;;  %p710_p0 = scmp.ne.s32.totalorder %s523_s13, %s709_s14  ;;  %p715_p2 = scmp.lt.s32.totalorder %s709_s14, %s709_s14 }
 0x191   :  { %672 = vmatpush3.bf16.msra.mxu1 %v671_v46  ;;  %700 = vmatprep.subr.bf16.mxu0 %v733_v3  ;;  %v535_v46 = vld [vmem:[%s1130_s6] ss:$0 sm:$0xff] }
 0x192   :  { %674 = vmatprep.subr.bf16.mxu1 %v673_v47  ;;  %p716_p3 = por %p715_p2, %p714_p1 }
 0x194   :  { %702 = vmatpush3.bf16.msra.mxu0 %v701_v44  ;;  %p717_p4 = pnand %p716_p3, %p710_p0 }
 0x195   :  { %676 = vmatpush3.bf16.msra.mxu1 %v675_v52 }
 0x196   :  { %678 = vmatprep.subr.bf16.mxu1 %v677_v53 }
 0x199   :  { %680 = vmatpush3.bf16.msra.mxu1 %v679_v58 }
 0x19a   :  { %682 = vmatprep.subr.bf16.mxu1 %v681_v59 }
 0x19d   :  { %684 = vmatpush3.bf16.msra.mxu1 %v683_v62 }
 0x19e   :  { %686 = vmatprep.subr.bf16.mxu1 %v685_v5 }
 0x1a1   :  { %688 = vmatpush3.bf16.msra.mxu1 %v687_v9 }
 0x1a2   :  { %690 = vmatprep.subr.bf16.mxu1 %v689_v16 }
 0x1a5   :  { %692 = vmatpush3.bf16.msra.mxu1 %v691_v21 }
 0x1a6   :  { %694 = vmatprep.subr.bf16.mxu1 %v693_v22 }
 0x1a9   :  { %696 = vmatpush3.bf16.msra.mxu1 %v695_v28 }
 0x25f   :  { %v272_v20 = vpop.f32.mrb[0].mxu1 }
 0x260   :  { %v273_v25 = vadd.f32 %v533_v10, %v272_v20  ;;  %v274_v26 = vpop.f32.mrb[1].mxu1 }
 0x262   :  { %v276_v29 = vmax.f32 %v273_v25, 0.0 }
 0x264   :  { %277 = vst.msk [vmem:[#allocation3] sm:$0x3] %vm155_vm0, %v276_v29  ;;  %v285_v30 = vrot.slane %v276_v29, %v284_v27  ;;  %v292_v31 = vcombine.high %v276_v29, %v276_v29 }
 0x266   :  { %v286_v32 = vcombine.high %v285_v30, %v285_v30  ;;  %v299_v33 = vrot.slane %v292_v31, %v284_v27 }
 0x268   :  { %287 = vrot.lane.b32.xlu0 %v286_v32, %s735_s11  ;;  %v302_v34 = vcombine.high %v299_v33, %v299_v33  ;;  %301 = vst.msk [vmem:[#allocation3 + $0x2] sm:$0x3] %vm155_vm0, %v299_v33 }
 0x26a   :  { %303 = vrot.lane.b32.xlu1 %v302_v34, %s735_s11 }
 0x2da   :  { %v288_v35 = vpop.permute.xlu0 %287 }
 0x2db   :  { %291 = vst.msk [vmem:[#allocation3] sm:$0x3] %vm290_vm5, %v288_v35 }
 0x2dc   :  { %v304_v36 = vpop.permute.xlu1 %303 }
 0x2dd   :  { %306 = vst.msk [vmem:[#allocation3 + $0x2] sm:$0x3] %vm290_vm5, %v304_v36 }
 0x2e4   :  { %v536_v37 = vld.sshfl [vmem:[#allocation3] sm:$0x33 pattern:$0x76325410] }
 0x2e5   :  { %v355_v38 = vcombine.high %v536_v37, %v536_v37 }
 0x2e7   :  { %422 = vmatprep.mubr.f32.mxu1 %v355_v38 }
 0x2e8   :  { %423 = vmatmul.mubr.f32.vlgmr.msra.gmra.mrb[2].mxu1 %v536_v37 }
 0x3bb   :  { %v571_v45 = vpop.f32.mrb[2].mxu1 }
 0x3bc   :  { %v572_v47 = vpop.f32.mrb[3].mxu1 }
 0x3bd   :  { %v573_v3 = vadd.f32 %v572_v47, %v571_v45 }
 0x3bf   :  { %v425_v48 = vadd.f32 %v573_v3, %v535_v46 }
 0x3c1   :  { %v428_v49 = vmax.f32 %v425_v48, 0.0 }
 0x3c3   :  { %588 = vmatmul.mubr.msk.f32.vlgmr.msra.gmra.mrb[4].mxu0 %vm440_vm7, %v428_v49 }
 0x496   :  { %v510_v51 = vpop.f32.mrb[4].mxu0 }
 0x497   :  { %v511_v6 = vadd.f32 %v537_v50, %v510_v51  ;;  %v589_v52 = vpop.f32.mrb[5].mxu0 }
 0x499   :  { %515 = vst.msk [vmem:[#allocation4] sm:$0x3] %vm514_vm8, %v511_v6 }
 0x49a   :  { %720 = shalt.err (!%p717_p4)
}
 0x49b   :  { %s721_s15 = scalar_lea.hbm %s1133_s9, 32 }
 0x49c   :  { %p722_p5 = scmp.ne.s32.totalorder %s1133_s9, %s721_s15  ;;  %p725_p6 = scmp.lt.u32.totalorder %s721_s15, %s1133_s9 }
 0x49e   :  { %p727_p7 = pnand %p725_p6, %p722_p5 }
 0x4a0   :  { %730 = shalt.err (!%p727_p7)
}
 0x4a1   :  { %525 = dma.vmem_to_hbm [thread:$0]  %s523_s13, 32, %s1133_s9, [#allocation5]  }
 0x4a2   :  { %731 = dma.done.wait [#allocation5], 32  }
 0x4a3   :  { %732 = vsyncadd [#allocation5], 4294967264 }
 0x4a4   :  { %529 = vsyncpa [#allocation5], 1 }

</bundles_post_ra>
